<compile_context>
chip_gen: v6e
topology: v6e:2x2x1
jax: 0.10.0
libtpu: 0.0.40
codegen_flags: <defaults>
</compile_context>

<pallas_src>
import jax
import jax.numpy as jnp
from jax.experimental import pallas as pl
from jax.experimental.pallas import tpu as pltpu


# ----------------------------------------------------------------------------
# Pass 1: attention gate (theta/phi/psi/sigmoid), y = sigm*x, W(y) conv,
#         per-batch accumulation of  S_b = sum_t wy_t        (Cin, 1)
#                                    G_b = sum_t wy_t wy_t^T (Cin, Cin)
#         (everything BN1/BN2 need downstream is derivable from S and G).
# ----------------------------------------------------------------------------
def _attn_gate_kernel(x_ref, g_ref, theta_w_ref, phi_w_ref, phi_b_ref,
                      psi_w_ref, psi_b_ref, w_w_ref,
                      attn_ref, wy_ref, sum_ref, gram_ref):
    # Tiled refs are (C, TILE_M): channels on sublanes, spatial on lanes.
    x = x_ref[...]                                   # (Cin, TILE_M)
    g = g_ref[...]                                   # (Cg,  TILE_M)

    # theta(x) + phi(g)  (1x1 convs as W @ X; upsample is identity here).
    f = jnp.dot(theta_w_ref[...], x, preferred_element_type=jnp.float32)
    f = f + jnp.dot(phi_w_ref[...], g, preferred_element_type=jnp.float32)
    f = jnp.maximum(f + phi_b_ref[...], 0.0)         # (inter, TILE_M)

    # psi(f) -> single channel: broadcast-multiply + sublane reduce (VPU/XLU)
    # instead of a degenerate 1-row MXU matmul.
    psi = jnp.sum(psi_w_ref[...] * f, axis=0, keepdims=True) + psi_b_ref[...]
    sigm = jax.nn.sigmoid(psi)                       # (1, TILE_M)
    attn_ref[...] = sigm

    # y = sigm.expand_as(x) * x ; W(y) 1x1 conv.  W's bias omitted: exactly
    # cancelled by the training-mode BatchNorm mean subtraction.
    w_y = jnp.dot(w_w_ref[...], sigm * x, preferred_element_type=jnp.float32)
    wy_ref[...] = w_y

    # Per-batch partial statistics, accumulated across the spatial grid axis.
    @pl.when(pl.program_id(1) == 0)
    def _():
        sum_ref[...] = jnp.zeros_like(sum_ref)
        gram_ref[...] = jnp.zeros_like(gram_ref)

    sum_ref[...] += jnp.sum(w_y, axis=1, keepdims=True)
    gram_ref[...] += jax.lax.dot_general(
        w_y, w_y, (((1,), (1,)), ((), ())),
        preferred_element_type=jnp.float32)


# ----------------------------------------------------------------------------
# Pass 2 (fused former passes 2+3):  out = relu(W_eff @ wy + c_eff)
#   W_eff = diag(s2) @ cg_w @ diag(s1),  c_eff = s2 * (cg_w @ t1) + t2
# computed host-side from the pass-1 statistics.
# ----------------------------------------------------------------------------
def _fused_out_kernel(wy_ref, w_eff_ref, c_eff_ref, out_ref):
    out_ref[...] = jnp.maximum(
        jnp.dot(w_eff_ref[...], wy_ref[...],
                preferred_element_type=jnp.float32) + c_eff_ref[...],
        0.0)


# ----------------------------------------------------------------------------
# Wrapper helpers
# ----------------------------------------------------------------------------
def _vmem_capacity_bytes():
    """Physical per-TensorCore VMEM; conservative fallback if the query fails."""
    try:
        return int(pltpu.get_tpu_info().vmem_capacity_bytes)
    except Exception:
        return 64 << 20   # v7x per-TC physical size; safe on all generations


def _pick_tile_m(hw, lane_cap):
    """Spatial tile: as large as the VMEM budget allows, dividing hw, lane-dense."""
    lane_cap = max(int(lane_cap), 128)
    if hw <= lane_cap:
        return hw
    best = None
    t = 128
    while t <= lane_cap:                      # largest mult-of-128 divisor <= cap
        if hw % t == 0:
            best = t
        t += 128
    if best is not None:
        return best
    best = 1                                  # fallback: largest divisor <= cap
    d = 1
    while d * d <= hw:
        if hw % d == 0:
            if d <= lane_cap:
                best = max(best, d)
            q = hw // d
            if q <= lane_cap:
                best = max(best, q)
        d += 1
    return best


@jax.jit
def multi_attention_block(x_nchw, g_nchw, params):
    """x_nchw: (N, Cin, H, W); g_nchw: (N, Cg, H, W). Returns (out NCHW, attention N1HW)."""
    n, cin, h, w = x_nchw.shape
    ng, cgc, hg, wg = g_nchw.shape
    assert n == ng and (h, w) == (hg, wg), \
        "sub_sample_factor=(1,1) path requires matched resolutions"

    (theta_w, phi_w, phi_b, psi_w, psi_b,
     w_w, w_b, w_bn_g, w_bn_b,
     cg_w, cg_b, cg_bn_g, cg_bn_b) = params
    del w_b, cg_b  # cancelled exactly by the training-mode BN mean subtraction
    inter = theta_w.shape[0]
    psi_w_col = psi_w.reshape(inter, 1)       # (inter, 1): sublane-broadcast form

    hw = h * w
    # NCHW -> (N, C, H*W): a free contiguous view, no transpose/copy.
    x3 = x_nchw.reshape(n, cin, hw)
    g3 = g_nchw.reshape(ng, cgc, hw)

    # ----- generation-aware VMEM budget & spatial tile sizing ---------------
    phys_vmem = _vmem_capacity_bytes()        # 64 MiB (v7x) .. 128 MiB (v5e/v6e)
    vmem_limit = int((phys_vmem * 3) // 4)    # scoped limit requested from Mosaic
    tile_budget = (phys_vmem * 11) // 20      # ~55% of physical for the blocks

    # Pass-1 per-lane f32 working set: double-buffered x/g/attn/wy blocks plus
    # temporaries (f, sigm*x, dot result) and slack.  Pass 2 is strictly smaller.
    per_lane_f32 = 2 * (2 * cin + cgc + 1) + inter + 2 * cin + 8
    lane_cap = tile_budget // (4 * per_lane_f32)
    tile_m = _pick_tile_m(hw, lane_cap)
    n_tiles = hw // tile_m
    grid = (n, n_tiles)

    params_stats = pltpu.CompilerParams(
        # Batch axis parallel (per-batch stat partials -> usable on v7x megacore);
        # spatial axis arbitrary (stats accumulate across it).
        dimension_semantics=("parallel", "arbitrary"),
        vmem_limit_bytes=vmem_limit,
    )
    params_par = pltpu.CompilerParams(
        dimension_semantics=("parallel", "parallel"),
        vmem_limit_bytes=vmem_limit,
    )

    def tiled_spec(c):
        return pl.BlockSpec((None, c, tile_m), lambda b, t: (b, 0, t))

    def full_spec(shape):
        return pl.BlockSpec(shape, lambda b, t: (0, 0))

    def batch_stat_spec(cols):
        return pl.BlockSpec((None, cin, cols), lambda b, t: (b, 0, 0))

    # ---------------- pass 1: attention gate + W(y) + BN statistics ---------
    attn3, wy3, sum_part, gram_part = pl.pallas_call(
        _attn_gate_kernel,
        grid=grid,
        in_specs=[
            tiled_spec(cin),                     # x
            tiled_spec(cgc),                     # gating signal
            full_spec((inter, cin)),             # theta.weight
            full_spec((inter, cgc)),             # phi.weight
            full_spec((inter, 1)),               # phi.bias
            full_spec((inter, 1)),               # psi.weight (column form)
            full_spec((1, 1)),                   # psi.bias
            full_spec((cin, cin)),               # W conv weight
        ],
        out_specs=(
            tiled_spec(1),                       # attention map
            tiled_spec(cin),                     # W(y)  (pre-BN1)
            batch_stat_spec(1),                  # per-batch channel sum of W(y)
            batch_stat_spec(cin),                # per-batch Gram of W(y)
        ),
        out_shape=(
            jax.ShapeDtypeStruct((n, 1, hw), jnp.float32),
            jax.ShapeDtypeStruct((n, cin, hw), jnp.float32),
            jax.ShapeDtypeStruct((n, cin, 1), jnp.float32),
            jax.ShapeDtypeStruct((n, cin, cin), jnp.float32),
        ),
        compiler_params=params_stats,
    )(x3, g3, theta_w, phi_w, phi_b, psi_w_col, psi_b, w_w)

    # ----- fold BN1, combine_gates conv and BN2 into a single affine --------
    eps = jnp.float32(1e-5)
    m_total = jnp.float32(n * hw)
    S = jnp.sum(sum_part, axis=0)                # (Cin, 1)   global sum of wy
    G = jnp.sum(gram_part, axis=0)               # (Cin, Cin) global Gram of wy

    mean1 = S / m_total
    # NOTE: E[x^2]-mean^2 variance (biased, f32) — can lose precision when
    # |mean| >> std; matches PyTorch within f32 tolerance for typical nets.
    var1 = jnp.maximum(jnp.diagonal(G)[:, None] / m_total - mean1 * mean1, 0.0)
    s1 = w_bn_g * jax.lax.rsqrt(var1 + eps)
    t1 = w_bn_b - mean1 * s1

    # cg = cg_w @ (s1*wy + t1) = A @ wy + b   (cg bias cancelled by BN2 mean)
    A = cg_w * s1.T                              # (Cin, Cin) = cg_w @ diag(s1)
    b_vec = cg_w @ t1                            # (Cin, 1)
    AS = A @ S
    sum2 = AS + m_total * b_vec
    ssq2 = (jnp.sum((A @ G) * A, axis=1, keepdims=True)
            + 2.0 * b_vec * AS + m_total * b_vec * b_vec)
    mean2 = sum2 / m_total
    var2 = jnp.maximum(ssq2 / m_total - mean2 * mean2, 0.0)
    s2 = cg_bn_g * jax.lax.rsqrt(var2 + eps)
    t2 = cg_bn_b - mean2 * s2

    w_eff = s2 * A                               # diag(s2) @ cg_w @ diag(s1)
    c_eff = s2 * b_vec + t2

    # ---------------- pass 2: BN1 + combine_gates + BN2 + ReLU (fused) ------
    out3 = pl.pallas_call(
        _fused_out_kernel,
        grid=grid,
        in_specs=[
            tiled_spec(cin),                     # W(y)
            full_spec((cin, cin)),               # W_eff
            full_spec((cin, 1)),                 # c_eff
        ],
        out_specs=tiled_spec(cin),
        out_shape=jax.ShapeDtypeStruct((n, cin, hw), jnp.float32),
        compiler_params=params_par,
    )(wy3, w_eff, c_eff)

    out = out3.reshape(n, cin, h, w)              # free view back to NCHW
    attn = attn3.reshape(n, 1, h, w)
    return out, attn


def init_params(key, in_size, gate_size, inter_size):
    """Deterministic synthetic parameters (1x1 conv weights stored as (Cout, Cin))."""
    ks = jax.random.split(key, 8)
    f32 = jnp.float32
    theta_w = 0.2 * jax.random.normal(ks[0], (inter_size, in_size), f32)   # theta: no bias
    phi_w = 0.2 * jax.random.normal(ks[1], (inter_size, gate_size), f32)
    phi_b = 0.1 * jax.random.normal(ks[2], (inter_size, 1), f32)
    psi_w = 0.2 * jax.random.normal(ks[3], (1, inter_size), f32)
    psi_b = jnp.zeros((1, 1), f32)
    w_w = 0.2 * jax.random.normal(ks[4], (in_size, in_size), f32)
    w_b = 0.1 * jax.random.normal(ks[5], (in_size, 1), f32)    # cancelled by training-mode BN
    w_bn_g = jnp.ones((in_size, 1), f32)
    w_bn_b = jnp.zeros((in_size, 1), f32)
    cg_w = 0.2 * jax.random.normal(ks[6], (in_size, in_size), f32)
    cg_b = 0.1 * jax.random.normal(ks[7], (in_size, 1), f32)   # cancelled by training-mode BN
    cg_bn_g = jnp.ones((in_size, 1), f32)
    cg_bn_b = jnp.zeros((in_size, 1), f32)
    return (theta_w, phi_w, phi_b, psi_w, psi_b,
            w_w, w_b, w_bn_g, w_bn_b,
            cg_w, cg_b, cg_bn_g, cg_bn_b)


if __name__ == "__main__":
    # MultiAttentionBlock(in_size=4, gate_size=8, inter_size=4,
    #                     nonlocal_mode='concatenation', sub_sample_factor=(1,1))
    N, IN_SIZE, GATE_SIZE, INTER_SIZE, H, W = 2, 4, 8, 4, 16, 16

    key = jax.random.PRNGKey(0)
    k_x, k_g, k_p = jax.random.split(key, 3)
    x = jax.random.normal(k_x, (N, IN_SIZE, H, W), jnp.float32)          # input (NCHW)
    gating = jax.random.normal(k_g, (N, GATE_SIZE, H, W), jnp.float32)   # gating_signal (NCHW)
    params = init_params(k_p, IN_SIZE, GATE_SIZE, INTER_SIZE)

    out, attention = multi_attention_block(x, gating, params)
    jax.block_until_ready((out, attention))

    assert out.shape == (N, IN_SIZE, H, W)
    assert attention.shape == (N, 1, H, W)
    assert bool(jnp.all(jnp.isfinite(out))) and bool(jnp.all(jnp.isfinite(attention)))
    print("KERNEL_OK")
</pallas_src>

<mosaic_0001>
module attributes {stable_mosaic.version = 11 : i64} {
  func.func @_attn_gate_kernel(%arg0: i32, %arg1: i32, %arg2: memref<1x4x256xf32, #tpu.memory_space<vmem>>, %arg3: memref<1x8x256xf32, #tpu.memory_space<vmem>>, %arg4: memref<4x4xf32, #tpu.memory_space<vmem>>, %arg5: memref<4x8xf32, #tpu.memory_space<vmem>>, %arg6: memref<4x1xf32, #tpu.memory_space<vmem>>, %arg7: memref<4x1xf32, #tpu.memory_space<vmem>>, %arg8: memref<1x1xf32, #tpu.memory_space<vmem>>, %arg9: memref<4x4xf32, #tpu.memory_space<vmem>>, %arg10: memref<1x1x256xf32, #tpu.memory_space<vmem>>, %arg11: memref<1x4x256xf32, #tpu.memory_space<vmem>>, %arg12: memref<1x4x1xf32, #tpu.memory_space<vmem>>, %arg13: memref<1x4x4xf32, #tpu.memory_space<vmem>>) attributes {dimension_semantics = [#tpu.dimension_semantics<parallel>, #tpu.dimension_semantics<arbitrary>], iteration_bounds = array<i64: 2, 1>, scalar_prefetch = 0 : i64, scratch_operands = 0 : i64, tpu.core_type = #tpu.core_type<tc>, window_params = [{transform_indices = @transform_0, window_bounds = array<i64: 1, 4, 256>}, {transform_indices = @transform_1, window_bounds = array<i64: 1, 8, 256>}, {pipeline_mode = #tpu.pipeline_mode<synchronous>, transform_indices = @transform_2, window_bounds = array<i64: 4, 4>}, {pipeline_mode = #tpu.pipeline_mode<synchronous>, transform_indices = @transform_3, window_bounds = array<i64: 4, 8>}, {pipeline_mode = #tpu.pipeline_mode<synchronous>, transform_indices = @transform_4, window_bounds = array<i64: 4, 1>}, {pipeline_mode = #tpu.pipeline_mode<synchronous>, transform_indices = @transform_5, window_bounds = array<i64: 4, 1>}, {pipeline_mode = #tpu.pipeline_mode<synchronous>, transform_indices = @transform_6, window_bounds = array<i64: 1, 1>}, {pipeline_mode = #tpu.pipeline_mode<synchronous>, transform_indices = @transform_7, window_bounds = array<i64: 4, 4>}, {transform_indices = @transform_8, window_bounds = array<i64: 1, 1, 256>}, {transform_indices = @transform_9, window_bounds = array<i64: 1, 4, 256>}, {transform_indices = @transform_10, window_bounds = array<i64: 1, 4, 1>}, {transform_indices = @transform_11, window_bounds = array<i64: 1, 4, 4>}]} {
    %c0 = arith.constant 0 : index
    %c0_0 = arith.constant 0 : index
    %c0_1 = arith.constant 0 : index
    %0 = vector.load %arg2[%c0, %c0_0, %c0_1] : memref<1x4x256xf32, #tpu.memory_space<vmem>>, vector<1x4x256xf32>
    %1 = vector.shape_cast %0 : vector<1x4x256xf32> to vector<4x256xf32>
    %c0_2 = arith.constant 0 : index
    %c0_3 = arith.constant 0 : index
    %c0_4 = arith.constant 0 : index
    %2 = vector.load %arg3[%c0_2, %c0_3, %c0_4] : memref<1x8x256xf32, #tpu.memory_space<vmem>>, vector<1x8x256xf32>
    %3 = vector.shape_cast %2 : vector<1x8x256xf32> to vector<8x256xf32>
    %c0_5 = arith.constant 0 : index
    %c0_6 = arith.constant 0 : index
    %4 = vector.load %arg4[%c0_5, %c0_6] : memref<4x4xf32, #tpu.memory_space<vmem>>, vector<4x4xf32>
    %cst = arith.constant dense<0.000000e+00> : vector<4x256xf32>
    %5 = tpu.matmul %4, %1, %cst {dimension_numbers = #tpu.dot_dimension_numbers<[1], [0], [0], [1], [0, 0, 1, 1], [], []>} : vector<4x4xf32>, vector<4x256xf32>, vector<4x256xf32> -> vector<4x256xf32>
    %c0_7 = arith.constant 0 : index
    %c0_8 = arith.constant 0 : index
    %6 = vector.load %arg5[%c0_7, %c0_8] : memref<4x8xf32, #tpu.memory_space<vmem>>, vector<4x8xf32>
    %cst_9 = arith.constant dense<0.000000e+00> : vector<4x256xf32>
    %7 = tpu.matmul %6, %3, %cst_9 {dimension_numbers = #tpu.dot_dimension_numbers<[1], [0], [0], [1], [0, 0, 1, 1], [], []>} : vector<4x8xf32>, vector<8x256xf32>, vector<4x256xf32> -> vector<4x256xf32>
    %8 = arith.addf %5, %7 : vector<4x256xf32>
    %c0_10 = arith.constant 0 : index
    %c0_11 = arith.constant 0 : index
    %9 = vector.load %arg6[%c0_10, %c0_11] : memref<4x1xf32, #tpu.memory_space<vmem>>, vector<4x1xf32>
    %10 = vector.broadcast %9 : vector<4x1xf32> to vector<4x256xf32>
    %11 = arith.addf %8, %10 : vector<4x256xf32>
    %cst_12 = arith.constant 0.000000e+00 : f32
    %12 = vector.broadcast %cst_12 : f32 to vector<4x256xf32>
    %13 = arith.maximumf %11, %12 : vector<4x256xf32>
    %c0_13 = arith.constant 0 : index
    %c0_14 = arith.constant 0 : index
    %14 = vector.load %arg7[%c0_13, %c0_14] : memref<4x1xf32, #tpu.memory_space<vmem>>, vector<4x1xf32>
    %15 = vector.broadcast %14 : vector<4x1xf32> to vector<4x256xf32>
    %16 = arith.mulf %15, %13 : vector<4x256xf32>
    %cst_15 = arith.constant dense<0.000000e+00> : vector<256xf32>
    %17 = vector.multi_reduction <add>, %16, %cst_15 [0] : vector<4x256xf32> to vector<256xf32>
    %18 = vector.shape_cast %17 : vector<256xf32> to vector<1x256xf32>
    %c0_16 = arith.constant 0 : index
    %c0_17 = arith.constant 0 : index
    %19 = vector.load %arg8[%c0_16, %c0_17] : memref<1x1xf32, #tpu.memory_space<vmem>>, vector<1x1xf32>
    %20 = vector.broadcast %19 : vector<1x1xf32> to vector<1x256xf32>
    %21 = arith.addf %18, %20 : vector<1x256xf32>
    %22 = arith.negf %21 : vector<1x256xf32>
    %23 = math.exp %22 : vector<1x256xf32>
    %cst_18 = arith.constant 1.000000e+00 : f32
    %24 = vector.broadcast %cst_18 : f32 to vector<1x256xf32>
    %25 = arith.addf %24, %23 : vector<1x256xf32>
    %26 = arith.divf %24, %25 : vector<1x256xf32>
    %c0_19 = arith.constant 0 : index
    %c0_20 = arith.constant 0 : index
    %c0_21 = arith.constant 0 : index
    %27 = vector.load %arg10[%c0_19, %c0_20, %c0_21] : memref<1x1x256xf32, #tpu.memory_space<vmem>>, vector<1x1x256xf32>
    %28 = vector.shape_cast %27 : vector<1x1x256xf32> to vector<1x256xf32>
    %29 = vector.shape_cast %26 : vector<1x256xf32> to vector<1x1x256xf32>
    tpu.vector_store %arg10[%c0_19, %c0_20, %c0_21], %29 {strides = array<i32>} : memref<1x1x256xf32, #tpu.memory_space<vmem>>, vector<1x1x256xf32>,
    %c0_22 = arith.constant 0 : index
    %c0_23 = arith.constant 0 : index
    %30 = vector.load %arg9[%c0_22, %c0_23] : memref<4x4xf32, #tpu.memory_space<vmem>>, vector<4x4xf32>
    %31 = vector.broadcast %26 : vector<1x256xf32> to vector<4x256xf32>
    %32 = arith.mulf %31, %1 : vector<4x256xf32>
    %cst_24 = arith.constant dense<0.000000e+00> : vector<4x256xf32>
    %33 = tpu.matmul %30, %32, %cst_24 {dimension_numbers = #tpu.dot_dimension_numbers<[1], [0], [0], [1], [0, 0, 1, 1], [], []>} : vector<4x4xf32>, vector<4x256xf32>, vector<4x256xf32> -> vector<4x256xf32>
    %c0_25 = arith.constant 0 : index
    %c0_26 = arith.constant 0 : index
    %c0_27 = arith.constant 0 : index
    %34 = vector.load %arg11[%c0_25, %c0_26, %c0_27] : memref<1x4x256xf32, #tpu.memory_space<vmem>>, vector<1x4x256xf32>
    %35 = vector.shape_cast %34 : vector<1x4x256xf32> to vector<4x256xf32>
    %36 = vector.shape_cast %33 : vector<4x256xf32> to vector<1x4x256xf32>
    tpu.vector_store %arg11[%c0_25, %c0_26, %c0_27], %36 {strides = array<i32>} : memref<1x4x256xf32, #tpu.memory_space<vmem>>, vector<1x4x256xf32>,
    %c0_i32 = arith.constant 0 : i32
    %37 = arith.cmpi eq, %arg1, %c0_i32 : i32
    %38 = arith.extui %37 : i1 to i32
    %c0_i32_28 = arith.constant 0 : i32
    %39 = arith.cmpi ne, %38, %c0_i32_28 : i32
    scf.if %39 {
      %cst_43 = arith.constant 0.000000e+00 : f32
      %55 = vector.broadcast %cst_43 : f32 to vector<4x1xf32>
      %c0_44 = arith.constant 0 : index
      %c0_45 = arith.constant 0 : index
      %c0_46 = arith.constant 0 : index
      %56 = vector.load %arg12[%c0_44, %c0_45, %c0_46] : memref<1x4x1xf32, #tpu.memory_space<vmem>>, vector<1x4x1xf32>
      %57 = vector.shape_cast %56 : vector<1x4x1xf32> to vector<4x1xf32>
      %58 = vector.shape_cast %55 : vector<4x1xf32> to vector<1x4x1xf32>
      tpu.vector_store %arg12[%c0_44, %c0_45, %c0_46], %58 {strides = array<i32>} : memref<1x4x1xf32, #tpu.memory_space<vmem>>, vector<1x4x1xf32>,
      %cst_47 = arith.constant 0.000000e+00 : f32
      %59 = vector.broadcast %cst_47 : f32 to vector<4x4xf32>
      %c0_48 = arith.constant 0 : index
      %c0_49 = arith.constant 0 : index
      %c0_50 = arith.constant 0 : index
      %60 = vector.load %arg13[%c0_48, %c0_49, %c0_50] : memref<1x4x4xf32, #tpu.memory_space<vmem>>, vector<1x4x4xf32>
      %61 = vector.shape_cast %60 : vector<1x4x4xf32> to vector<4x4xf32>
      %62 = vector.shape_cast %59 : vector<4x4xf32> to vector<1x4x4xf32>
      tpu.vector_store %arg13[%c0_48, %c0_49, %c0_50], %62 {strides = array<i32>} : memref<1x4x4xf32, #tpu.memory_space<vmem>>, vector<1x4x4xf32>,
    } else {
    }
    %c0_29 = arith.constant 0 : index
    %c0_30 = arith.constant 0 : index
    %c0_31 = arith.constant 0 : index
    %40 = vector.load %arg12[%c0_29, %c0_30, %c0_31] : memref<1x4x1xf32, #tpu.memory_space<vmem>>, vector<1x4x1xf32>
    %41 = vector.shape_cast %40 : vector<1x4x1xf32> to vector<4x1xf32>
    %cst_32 = arith.constant dense<0.000000e+00> : vector<4xf32>
    %42 = vector.multi_reduction <add>, %33, %cst_32 [1] : vector<4x256xf32> to vector<4xf32>
    %43 = vector.shape_cast %42 : vector<4xf32> to vector<4x1xf32>
    %44 = arith.addf %41, %43 : vector<4x1xf32>
    %c0_33 = arith.constant 0 : index
    %c0_34 = arith.constant 0 : index
    %c0_35 = arith.constant 0 : index
    %45 = vector.load %arg12[%c0_33, %c0_34, %c0_35] : memref<1x4x1xf32, #tpu.memory_space<vmem>>, vector<1x4x1xf32>
    %46 = vector.shape_cast %45 : vector<1x4x1xf32> to vector<4x1xf32>
    %47 = vector.shape_cast %44 : vector<4x1xf32> to vector<1x4x1xf32>
    tpu.vector_store %arg12[%c0_33, %c0_34, %c0_35], %47 {strides = array<i32>} : memref<1x4x1xf32, #tpu.memory_space<vmem>>, vector<1x4x1xf32>,
    %c0_36 = arith.constant 0 : index
    %c0_37 = arith.constant 0 : index
    %c0_38 = arith.constant 0 : index
    %48 = vector.load %arg13[%c0_36, %c0_37, %c0_38] : memref<1x4x4xf32, #tpu.memory_space<vmem>>, vector<1x4x4xf32>
    %49 = vector.shape_cast %48 : vector<1x4x4xf32> to vector<4x4xf32>
    %cst_39 = arith.constant dense<0.000000e+00> : vector<4x4xf32>
    %50 = tpu.matmul %33, %33, %cst_39 {dimension_numbers = #tpu.dot_dimension_numbers<[1], [1], [0], [0], [0, 0, 1, 0], [], []>} : vector<4x256xf32>, vector<4x256xf32>, vector<4x4xf32> -> vector<4x4xf32>
    %51 = arith.addf %49, %50 : vector<4x4xf32>
    %c0_40 = arith.constant 0 : index
    %c0_41 = arith.constant 0 : index
    %c0_42 = arith.constant 0 : index
    %52 = vector.load %arg13[%c0_40, %c0_41, %c0_42] : memref<1x4x4xf32, #tpu.memory_space<vmem>>, vector<1x4x4xf32>
    %53 = vector.shape_cast %52 : vector<1x4x4xf32> to vector<4x4xf32>
    %54 = vector.shape_cast %51 : vector<4x4xf32> to vector<1x4x4xf32>
    tpu.vector_store %arg13[%c0_40, %c0_41, %c0_42], %54 {strides = array<i32>} : memref<1x4x4xf32, #tpu.memory_space<vmem>>, vector<1x4x4xf32>,
    return
  }
  func.func @transform_0(%arg0: i32, %arg1: i32) -> (i32, i32, i32) {
    %c0_i32 = arith.constant 0 : i32
    %c0_i32_0 = arith.constant 0 : i32
    return %arg0, %c0_i32, %arg1 : i32, i32, i32
  }
  func.func @transform_1(%arg0: i32, %arg1: i32) -> (i32, i32, i32) {
    %c0_i32 = arith.constant 0 : i32
    %c0_i32_0 = arith.constant 0 : i32
    return %arg0, %c0_i32, %arg1 : i32, i32, i32
  }
  func.func @transform_2(%arg0: i32, %arg1: i32) -> (i32, i32) {
    %c0_i32 = arith.constant 0 : i32
    %c0_i32_0 = arith.constant 0 : i32
    %c0_i32_1 = arith.constant 0 : i32
    return %c0_i32, %c0_i32_0 : i32, i32
  }
  func.func @transform_3(%arg0: i32, %arg1: i32) -> (i32, i32) {
    %c0_i32 = arith.constant 0 : i32
    %c0_i32_0 = arith.constant 0 : i32
    %c0_i32_1 = arith.constant 0 : i32
    return %c0_i32, %c0_i32_0 : i32, i32
  }
  func.func @transform_4(%arg0: i32, %arg1: i32) -> (i32, i32) {
    %c0_i32 = arith.constant 0 : i32
    %c0_i32_0 = arith.constant 0 : i32
    %c0_i32_1 = arith.constant 0 : i32
    return %c0_i32, %c0_i32_0 : i32, i32
  }
  func.func @transform_5(%arg0: i32, %arg1: i32) -> (i32, i32) {
    %c0_i32 = arith.constant 0 : i32
    %c0_i32_0 = arith.constant 0 : i32
    %c0_i32_1 = arith.constant 0 : i32
    return %c0_i32, %c0_i32_0 : i32, i32
  }
  func.func @transform_6(%arg0: i32, %arg1: i32) -> (i32, i32) {
    %c0_i32 = arith.constant 0 : i32
    %c0_i32_0 = arith.constant 0 : i32
    %c0_i32_1 = arith.constant 0 : i32
    return %c0_i32, %c0_i32_0 : i32, i32
  }
  func.func @transform_7(%arg0: i32, %arg1: i32) -> (i32, i32) {
    %c0_i32 = arith.constant 0 : i32
    %c0_i32_0 = arith.constant 0 : i32
    %c0_i32_1 = arith.constant 0 : i32
    return %c0_i32, %c0_i32_0 : i32, i32
  }
  func.func @transform_8(%arg0: i32, %arg1: i32) -> (i32, i32, i32) {
    %c0_i32 = arith.constant 0 : i32
    %c0_i32_0 = arith.constant 0 : i32
    return %arg0, %c0_i32, %arg1 : i32, i32, i32
  }
  func.func @transform_9(%arg0: i32, %arg1: i32) -> (i32, i32, i32) {
    %c0_i32 = arith.constant 0 : i32
    %c0_i32_0 = arith.constant 0 : i32
    return %arg0, %c0_i32, %arg1 : i32, i32, i32
  }
  func.func @transform_10(%arg0: i32, %arg1: i32) -> (i32, i32, i32) {
    %c0_i32 = arith.constant 0 : i32
    %c0_i32_0 = arith.constant 0 : i32
    %c0_i32_1 = arith.constant 0 : i32
    return %arg0, %c0_i32, %c0_i32_0 : i32, i32, i32
  }
  func.func @transform_11(%arg0: i32, %arg1: i32) -> (i32, i32, i32) {
    %c0_i32 = arith.constant 0 : i32
    %c0_i32_0 = arith.constant 0 : i32
    %c0_i32_1 = arith.constant 0 : i32
    return %arg0, %c0_i32, %c0_i32_0 : i32, i32, i32
  }
}

module attributes {stable_mosaic.version = 11 : i64} {
  func.func @_fused_out_kernel(%arg0: i32, %arg1: i32, %arg2: memref<1x4x256xf32, #tpu.memory_space<vmem>>, %arg3: memref<4x4xf32, #tpu.memory_space<vmem>>, %arg4: memref<4x1xf32, #tpu.memory_space<vmem>>, %arg5: memref<1x4x256xf32, #tpu.memory_space<vmem>>) attributes {dimension_semantics = [#tpu.dimension_semantics<parallel>, #tpu.dimension_semantics<parallel>], iteration_bounds = array<i64: 2, 1>, scalar_prefetch = 0 : i64, scratch_operands = 0 : i64, tpu.core_type = #tpu.core_type<tc>, window_params = [{transform_indices = @transform_0, window_bounds = array<i64: 1, 4, 256>}, {pipeline_mode = #tpu.pipeline_mode<synchronous>, transform_indices = @transform_1, window_bounds = array<i64: 4, 4>}, {pipeline_mode = #tpu.pipeline_mode<synchronous>, transform_indices = @transform_2, window_bounds = array<i64: 4, 1>}, {transform_indices = @transform_3, window_bounds = array<i64: 1, 4, 256>}]} {
    %c0 = arith.constant 0 : index
    %c0_0 = arith.constant 0 : index
    %0 = vector.load %arg3[%c0, %c0_0] : memref<4x4xf32, #tpu.memory_space<vmem>>, vector<4x4xf32>
    %c0_1 = arith.constant 0 : index
    %c0_2 = arith.constant 0 : index
    %c0_3 = arith.constant 0 : index
    %1 = vector.load %arg2[%c0_1, %c0_2, %c0_3] : memref<1x4x256xf32, #tpu.memory_space<vmem>>, vector<1x4x256xf32>
    %2 = vector.shape_cast %1 : vector<1x4x256xf32> to vector<4x256xf32>
    %cst = arith.constant dense<0.000000e+00> : vector<4x256xf32>
    %3 = tpu.matmul %0, %2, %cst {dimension_numbers = #tpu.dot_dimension_numbers<[1], [0], [0], [1], [0, 0, 1, 1], [], []>} : vector<4x4xf32>, vector<4x256xf32>, vector<4x256xf32> -> vector<4x256xf32>
    %c0_4 = arith.constant 0 : index
    %c0_5 = arith.constant 0 : index
    %4 = vector.load %arg4[%c0_4, %c0_5] : memref<4x1xf32, #tpu.memory_space<vmem>>, vector<4x1xf32>
    %5 = vector.broadcast %4 : vector<4x1xf32> to vector<4x256xf32>
    %6 = arith.addf %3, %5 : vector<4x256xf32>
    %cst_6 = arith.constant 0.000000e+00 : f32
    %7 = vector.broadcast %cst_6 : f32 to vector<4x256xf32>
    %8 = arith.maximumf %6, %7 : vector<4x256xf32>
    %c0_7 = arith.constant 0 : index
    %c0_8 = arith.constant 0 : index
    %c0_9 = arith.constant 0 : index
    %9 = vector.load %arg5[%c0_7, %c0_8, %c0_9] : memref<1x4x256xf32, #tpu.memory_space<vmem>>, vector<1x4x256xf32>
    %10 = vector.shape_cast %9 : vector<1x4x256xf32> to vector<4x256xf32>
    %11 = vector.shape_cast %8 : vector<4x256xf32> to vector<1x4x256xf32>
    tpu.vector_store %arg5[%c0_7, %c0_8, %c0_9], %11 {strides = array<i32>} : memref<1x4x256xf32, #tpu.memory_space<vmem>>, vector<1x4x256xf32>,
    return
  }
  func.func @transform_0(%arg0: i32, %arg1: i32) -> (i32, i32, i32) {
    %c0_i32 = arith.constant 0 : i32
    %c0_i32_0 = arith.constant 0 : i32
    return %arg0, %c0_i32, %arg1 : i32, i32, i32
  }
  func.func @transform_1(%arg0: i32, %arg1: i32) -> (i32, i32) {
    %c0_i32 = arith.constant 0 : i32
    %c0_i32_0 = arith.constant 0 : i32
    %c0_i32_1 = arith.constant 0 : i32
    return %c0_i32, %c0_i32_0 : i32, i32
  }
  func.func @transform_2(%arg0: i32, %arg1: i32) -> (i32, i32) {
    %c0_i32 = arith.constant 0 : i32
    %c0_i32_0 = arith.constant 0 : i32
    %c0_i32_1 = arith.constant 0 : i32
    return %c0_i32, %c0_i32_0 : i32, i32
  }
  func.func @transform_3(%arg0: i32, %arg1: i32) -> (i32, i32, i32) {
    %c0_i32 = arith.constant 0 : i32
    %c0_i32_0 = arith.constant 0 : i32
    return %arg0, %c0_i32, %arg1 : i32, i32, i32
  }
}

</mosaic_0001>

<bundles_post_ra>
// kernel: multi_attention_block.3
= control target key start
LH: loop header
LB: loop body
LE: loop exit
PB: predicated region body
PF: predicated region fallthrough
CT: control target
= control target key end

     0   :  { %s484_s12 = smov 0   ;;  %s486_s13 = smov 0   ;;  %s523_s0 = inlined_call_operand.vmem [shape: f32[2,4,256], index: 0, kind: input, shape index: {}]   ;;  %s524_s1 = inlined_call_operand.vmem [shape: f32[4,4], index: 1, kind: input, shape index: {}]   ;;  %s525_s2 = inlined_call_operand.vmem [shape: f32[4,1], index: 2, kind: input, shape index: {}]   ;;  %s526_s3 = inlined_call_operand.vmem [shape: f32[2,4,256], index: 3, kind: output, shape index: {}]  }
   0x1   :  { %s488_s14 = smov 0  }
   0x2 LB: > { %s25_s15 = sadd.s32 1, %s456_s13  ;;  %p398_p0 = scmp.ge.s32.totalorder %s460_s14, 1  ;;  %s460_s14 = sphi %s488_s14, %s13_s14   ;;  %s456_s13 = sphi %s486_s13, %s528_s13   ;;  %s452_s12 = sphi %s484_s12, %s527_s12  }
   0x3   : > { %p27_p1 = scmp.ge.s32.totalorder %s25_s15, 2  ;;  %p158_p2 = scmp.lt.s32.totalorder %s460_s14, 3 }
   0x5   : > { %s530_s15 = smov (%p27_p1, %s25_s15), 0  ;;  %p159_p3 = pnand %p398_p0, %p158_p2 }
   0x6   : > { %p191_p4 = scmp.lt.s32.totalorder (!%p159_p3), %s452_s12, 1 }
   0x7   : > { %162 = sbr.rel (%p159_p3) target bundleno = 222 (0xde), region = 32 }
   0xc   : > { %v462_v0 = vmov 0.0   ;;  %v212_v1 = vld [vmem:[%s525_s2] sm:$0xf]  ;;  %s532_s12 = smov (!%p191_p4, %s452_s12), 1  ;;  %v463_v2 = vmov 0   ;;  %vm224_vm0 = vcmask 1043456  }
   0xd   : > { %293 = vmatprep.mubr.f32.mxu0 %v462_v0  ;;  %436 = vset.pattern.permute.xlu0 %v463_v2  ;;  %s408_s18 = sshll.u32 %s532_s12, 3  ;;  %v210_v5 = vld [vmem:[%s524_s1] sm:$0xf]  ;;  %vm220_vm1 = vcmask 31744  }
   0xe   : > { %215 = vperm.xlu0 %436, %v212_v1   ;;  %s198_s21 = scalar_lea.vmem %s523_s0, %s408_s18  ;;  %s208_s26 = scalar_lea.vmem %s526_s3, %s408_s18 }
   0xf   : > { %v211_v3 = vld [vmem:[%s198_s21] sm:$0xff] }
  0x10   : > { %v219_v4 = vcombine.high %v211_v3, %v211_v3 }
  0x12   : > { %403 = vmatprep.subr.msk.mxu0 %vm224_vm0, %v219_v4 }
  0x13   : > { %404 = vmatpush1.msk.msra.mxu0 %vm224_vm0, %v211_v3 }
  0x14   : > { %405 = vmatmul.mubr.msk.f32.vlgmr.msra.gmra.mxu0 %vm220_vm1, %v210_v5 }
  0x89   : > { %v216_v6 = vpop.permute.xlu0 %215 }
  0xd4   : > { %v295_v7 = vpop.f32.mrf.mxu0 }
  0xd5   : > { %v296_v8 = vadd.f32 %v295_v7, %v216_v6 }
  0xd6   : > { %v297_v9 = vpop.f32.mrf.mxu0 }
  0xd7   : > { %v298_v10 = vadd.f32 %v297_v9, %v216_v6  ;;  %v300_v11 = vmax.f32 %v296_v8, 0.0 }
  0xd9   : > { %v301_v12 = vmax.f32 %v298_v10, 0.0 }
  0xdb   : > { %v304_v13 = vcombine.low %v300_v11, %v301_v12 }
  0xdd   : > { %306 = vst [vmem:[%s208_s26] sm:$0xff] %v304_v13 }
  0xde PF: > { %s13_s14 = sadd.s32 1, %s460_s14   ;;  %s527_s12 = smov %s456_s13 }
  0xdf   : > { %p10_p5 = scmp.ge.s32.totalorder %s13_s14, 4   ;;  %s528_s13 = smov %s530_s15 }
  0xe1   :  { %12 = sbr.rel (!%p10_p5) target bundleno = 2 (0x2), region = 62 }

// kernel: multi_attention_block.2
= control target key start
LH: loop header
LB: loop body
LE: loop exit
PB: predicated region body
PF: predicated region fallthrough
CT: control target
= control target key end

     0   :  { %s1294_s19 = smov 0   ;;  %s1296_s20 = smov 0   ;;  %s1391_s0 = inlined_call_operand.vmem [shape: f32[2,4,256], index: 0, kind: input, shape index: {}]   ;;  %s1392_s1 = inlined_call_operand.vmem [shape: f32[2,8,256], index: 1, kind: input, shape index: {}]   ;;  %s1393_s2 = inlined_call_operand.vmem [shape: f32[4,4], index: 2, kind: input, shape index: {}]   ;;  %s1394_s3 = inlined_call_operand.vmem [shape: f32[4,8], index: 3, kind: input, shape index: {}]   ;;  %s1395_s4 = inlined_call_operand.vmem [shape: f32[4,1], index: 4, kind: input, shape index: {}]   ;;  %s1396_s5 = inlined_call_operand.vmem [shape: f32[4,1], index: 5, kind: input, shape index: {}]   ;;  %s1397_s6 = inlined_call_operand.<no memory space> [shape: f32[1,1], index: 6, kind: input, shape index: {}]   ;;  %s1398_s7 = inlined_call_operand.vmem [shape: f32[4,4], index: 7, kind: input, shape index: {}]   ;;  %s1399_s8 = inlined_call_operand.vmem [shape: f32[2,1,256], index: 8, kind: output, shape index: {0}]   ;;  %s1400_s9 = inlined_call_operand.vmem [shape: f32[2,4,256], index: 9, kind: output, shape index: {1}]   ;;  %s1401_s10 = inlined_call_operand.vmem [shape: f32[2,4,1], index: 10, kind: output, shape index: {2}]   ;;  %s1402_s11 = inlined_call_operand.vmem [shape: f32[2,4,4], index: 11, kind: output, shape index: {3}]  }
   0x1   :  { %v17_v0 = vstv %s1397_s6  ;;  %s1298_s21 = smov 0  }
   0x2   :  { %18 = vst [vmem:[#allocation2] sm:$0x1] %v17_v0 }
   0x3 LB: > { %s36_s6 = sadd.s32 1, %s1222_s20  ;;  %p1142_p0 = scmp.ge.s32.totalorder %s1226_s21, 1  ;;  %s1226_s21 = sphi %s1298_s21, %s24_s21   ;;  %s1222_s20 = sphi %s1296_s20, %s1404_s20   ;;  %s1218_s19 = sphi %s1294_s19, %s1403_s19  }
   0x4   : > { %p38_p1 = scmp.ge.s32.totalorder %s36_s6, 2  ;;  %p386_p2 = scmp.lt.s32.totalorder %s1226_s21, 3 }
   0x6   : > { %s1406_s6 = smov (%p38_p1, %s36_s6), 0  ;;  %p387_p3 = pnand %p1142_p0, %p386_p2 }
   0x7   : > { %p460_p4 = scmp.lt.s32.totalorder (!%p387_p3), %s1218_s19, 1 }
   0x8   : > { %390 = sbr.rel (%p387_p3) target bundleno = 672 (0x2a0), region = 52 }
   0xd   : > { %v1228_v1 = vmov 0.0   ;;  %v668_v2 = vld [vmem:[%s1395_s4] sm:$0xf]  ;;  %s1408_s19 = smov (!%p460_p4, %s1218_s19), 1  ;;  %v1229_v3 = vmov 0   ;;  %vm511_vm0 = vcmask 64512   ;;  %v706_v23 = vlaneseq }
   0xe   : > { %579 = vmatprep.mubr.f32.mxu0 %v1228_v1  ;;  %661 = vmatprep.mubr.f32.mxu1 %v1228_v1  ;;  %v700_v4 = vld [vmem:[#allocation2] sm:$0x1]  ;;  %s1164_s24 = sshll.u32 %s1408_s19, 4  ;;  %s1163_s25 = sshll.u32 %s1408_s19, 3  ;;  %vm592_vm1 = vcmask 1043456   ;;  %vm588_vm2 = vcmask 31744  }
   0xf   : > { %1193 = vset.pattern.permute.xlu0 %v1229_v3  ;;  %1194 = vset.pattern.permute.xlu1 %v1229_v3  ;;  %v678_v5 = vld [vmem:[%s1396_s5] sm:$0xf]  ;;  %s477_s30 = scalar_lea.vmem %s1392_s1, %s1164_s24  ;;  %s467_s16 = scalar_lea.vmem %s1391_s0, %s1163_s25  ;;  %v707_v29 = vshrl.u32 %v706_v23, 7  ;;  %v1230_v53 = vmov 1966171168   ;;  %vm744_vm3 = vcmp.lt.s32.totalorder %v706_v23, 256 }
  0x10   : > { %671 = vperm.xlu0 %1193, %v668_v2   ;;  %703 = vperm.xlu1 %1194, %v700_v4   ;;  %v510_v6 = vld [vmem:[%s1394_s3] sm:$0xf]  ;;  %v508_v7 = vld [vmem:[%s477_s30 + $0x8] sm:$0xff]  ;;  %v728_v54 = vunpack.c.l.s4 %v1230_v53  ;;  %s1147_s22 = sshll.u32 %s1408_s19, 1  ;;  %s1150_s29 = sshll.u32 %s1408_s19, 2  ;;  %vm840_vm4 = vcmask 3072  }
  0x11   : > { %v507_v8 = vld [vmem:[%s477_s30] sm:$0xff]  ;;  %545 = vmatprep.subr.mxu0 %v508_v7  ;;  %v708_v35 = vsub.s32 0, %v707_v29  ;;  %s486_s28 = scalar_lea.vmem %s1399_s8, %s1147_s22  ;;  %s501_s13 = scalar_lea.vmem %s1401_s10, %s1150_s29  ;;  %vm842_vm5 = vcmask 27648  }
  0x12   : > { %v1335_v9 = vld [vmem:[%s467_s16] sm:$0xff]  ;;  %546 = vmatpush1.msra.mxu0 %v507_v8  ;;  %v729_v55 = vunpack.c.0.s8 %v728_v54  ;;  %841 = vst.msk [vmem:[%s501_s13] sm:$0xf] %vm840_vm4, %v1228_v1  ;;  %s496_s16 = scalar_lea.vmem %s1400_s9, %s1163_s25  ;;  %s505_s19 = scalar_lea.vmem %s1402_s11, %s1150_s29 }
  0x13   : > { %v1339_v10 = vcombine.high %v1335_v9, %v1335_v9  ;;  %v509_v11 = vld [vmem:[%s1393_s2] sm:$0xf]  ;;  %1152 = vmatmul.mubr.msk.f32.vlgmr.msra.gmra.mxu0 %vm511_vm0, %v510_v6  ;;  %843 = vst.msk [vmem:[%s505_s19] sm:$0xf] %vm842_vm5, %v1228_v1 }
  0x14   : > { %681 = vperm.xlu0 %1193, %v678_v5   ;;  %824 = vmatprep.mubr.f32.mxu0 %v1228_v1  ;;  %v732_v57 = vsub.s32 %v729_v55, %v707_v29  ;;  %v747_v62 = vld [vmem:[%s1398_s7] sm:$0xf] }
  0x15   : > { %1153 = vmatprep.subr.msk.mxu1 %vm592_vm1, %v1339_v10 }
  0x16   : > { %1154 = vmatpush1.msk.msra.mxu1 %vm592_vm1, %v1335_v9 }
  0x17   : > { %1155 = vmatmul.mubr.msk.f32.vlgmr.msra.gmra.mxu1 %vm588_vm2, %v509_v11 }
  0x19   : > { %v844_v8 = vld [vmem:[%s501_s13] sm:$0xf] }
  0x1a   : > { %v853_v11 = vld [vmem:[%s505_s19] sm:$0xf] }
  0x8b   : > { %v672_v13 = vpop.permute.xlu0 %671  ;;  %v704_v36 = vpop.permute.xlu1 %703 }
  0x8c   : > { %v709_v41 = vrot.slane %v704_v36, %v708_v35 }
  0x8f   : > { %v682_v22 = vpop.permute.xlu0 %681 }
  0xd3   : > { %v581_v12 = vpop.f32.mrf.mxu0 }
  0xd5   : > { %v583_v16 = vpop.f32.mrf.mxu0 }
  0xd7   : > { %v663_v14 = vpop.f32.mrf.mxu1 }
  0xd8   : > { %v664_v15 = vadd.f32 %v663_v14, %v581_v12 }
  0xd9   : > { %v665_v17 = vpop.f32.mrf.mxu1 }
  0xda   : > { %v674_v18 = vadd.f32 %v672_v13, %v664_v15  ;;  %v666_v19 = vadd.f32 %v665_v17, %v583_v16 }
  0xdc   : > { %v675_v20 = vadd.f32 %v672_v13, %v666_v19  ;;  %v676_v21 = vmax.f32 %v674_v18, 0.0 }
  0xde   : > { %v677_v24 = vmax.f32 %v675_v20, 0.0  ;;  %v684_v25 = vmul.f32 %v682_v22, %v676_v21 }
  0xe0   : > { %v685_v26 = vmul.f32 %v682_v22, %v677_v24  ;;  %v686_v27 = vsel %vm592_vm1, %v684_v25, 0.0 }
  0xe1   : > { %v687_v28 = vrot.slane %v686_v27, 4 }
  0xe2   : > { %v693_v30 = vsel %vm592_vm1, %v685_v26, 0.0 }
  0xe3   : > { %v688_v31 = vadd.f32 %v687_v28, %v686_v27  ;;  %v694_v32 = vrot.slane %v693_v30, 4 }
  0xe5   : > { %v689_v33 = vrot.slane %v688_v31, 2  ;;  %v695_v34 = vadd.f32 %v694_v32, %v693_v30 }
  0xe7   : > { %v690_v37 = vadd.f32 %v689_v33, %v688_v31  ;;  %v696_v38 = vrot.slane %v695_v34, 2 }
  0xe9   : > { %v697_v39 = vadd.f32 %v696_v38, %v695_v34  ;;  %v691_v40 = vrot.slane %v690_v37, 1 }
  0xeb   : > { %v692_v42 = vadd.f32 %v691_v40, %v690_v37  ;;  %v698_v43 = vrot.slane %v697_v39, 1 }
  0xed   : > { %v699_v44 = vadd.f32 %v698_v43, %v697_v39  ;;  %v710_v45 = vadd.f32 %v709_v41, %v692_v42 }
  0xef   : > { %v711_v46 = vadd.f32 %v709_v41, %v699_v44  ;;  %v1156_v47 = vmul.f32 -1.442695, %v710_v45 }
  0xf1   : > { %1196 = vpow2.f32 %v1156_v47  ;;  %v1157_v48 = vmul.f32 -1.442695, %v711_v46 }
  0xf3   : > { %1198 = vpow2.f32 %v1157_v48 }
  0xfe   : > { %v1197_v49 = vpop.eup %1196 }
  0xff   : > { %v718_v50 = vadd.f32 1.0, %v1197_v49 }
 0x100   : > { %v1199_v51 = vpop.eup %1198 }
 0x101   : > { %v719_v52 = vadd.f32 1.0, %v1199_v51  ;;  %1200 = vrcp.f32 %v718_v50 }
 0x103   : > { %1202 = vrcp.f32 %v719_v52 }
 0x10e   : > { %v1201_v56 = vpop.eup %1200 }
 0x10f   : > { %v749_v61 = vmul.f32 %v1201_v56, %v1335_v9 }
 0x110   : > { %v1203_v58 = vpop.eup %1202 }
 0x111   : > { %v726_v59 = vcombine.low %v1201_v56, %v1203_v58  ;;  %v750_v60 = vmul.f32 %v1203_v58, %v1339_v10 }
 0x113   : > { %v733_v63 = vrot.slane %v726_v59, %v732_v57  ;;  %1158 = vmatprep.subr.msk.mxu0 %vm592_vm1, %v750_v60 }
 0x114   : > { %1159 = vmatpush1.msk.msra.mxu0 %vm592_vm1, %v749_v61 }
 0x115   : > { %v740_v0 = vrot.slane %v733_v63, %v732_v57  ;;  %1160 = vmatmul.mubr.msk.f32.vlgmr.msra.gmra.mxu0 %vm588_vm2, %v747_v62 }
 0x117   : > { %746 = vst.msk [vmem:[%s486_s28] sm:$0x3] %vm744_vm3, %v740_v0 }
 0x1d5   : > { %v826_v2 = vpop.f32.mrf.mxu0 }
 0x1d6   : > { %v845_v5 = vsel %vm592_vm1, %v826_v2, 0.0 }
 0x1d7   : > { %v828_v3 = vpop.f32.mrf.mxu0 }
 0x1d8   : > { %v833_v4 = vcombine.low %v826_v2, %v828_v3  ;;  %884 = vmatprep.subr.mxu1 %v828_v3  ;;  %918 = vmatprep.mubr.f32.mxu1 %v828_v3  ;;  %v846_v6 = vsel %vm592_vm1, %v828_v3, 0.0 }
 0x1d9   : > { %885 = vmatpush1.xpose.msra.mxu1 %v826_v2  ;;  %v847_v7 = vadd.f32 %v846_v6, %v845_v5 }
 0x1da   : > { %835 = vst [vmem:[%s496_s16] sm:$0xff] %v833_v4 }
 0x1db   : > { %848 = vadd.xlane.f32.xlu1 %v847_v7 }
 0x1dc   : > { %919 = vmatmul.mubr.f32.vlgmr.msra.gmra.mxu1 %v826_v2 }
 0x264   : > { %v849_v9 = vpop.xlane.xlu1 %848 }
 0x265   : > { %v850_v10 = vadd.f32 %v849_v9, %v844_v8 }
 0x267   : > { %852 = vst.msk [vmem:[%s501_s13] sm:$0xf] %vm840_vm4, %v850_v10 }
 0x29c   : > { %v920_v12 = vpop.f32.mrf.mxu1 }
 0x29d   : > { %v924_v13 = vadd.f32 %v920_v12, %v853_v11 }
 0x29e   : > { %v922_v14 = vpop.f32.mrf.mxu1 }
 0x29f   : > { %926 = vst.msk [vmem:[%s505_s19] sm:$0xf] %vm842_vm5, %v924_v13 }
 0x2a0 PF: > { %s24_s21 = sadd.s32 1, %s1226_s21   ;;  %s1403_s19 = smov %s1222_s20 }
 0x2a1   : > { %p21_p5 = scmp.ge.s32.totalorder %s24_s21, 4   ;;  %s1404_s20 = smov %s1406_s6 }
 0x2a3   :  { %23 = sbr.rel (!%p21_p5) target bundleno = 3 (0x3), region = 125 }

</bundles_post_ra>
